<compile_context>
chip_gen: v7x
topology: tpu7x:2x2x1
jax: 0.10.0
libtpu: 0.0.40
codegen_flags: <defaults>
</compile_context>

<pallas_src>
import jax
import jax.numpy as jnp
from jax import lax
from jax.experimental import pallas as pl
from jax.experimental.pallas import tpu as pltpu


_NEG_SLOPE = 0.01                      # torch.nn.LeakyReLU default
_NT = (((1,), (1,)), ((), ()))         # contract last dims of both operands


def _leaky(x):
    return jnp.maximum(x, _NEG_SLOPE * x)


def edge_aggregate_global_kernel(
    edges_ref, ebc_ref, ebr_ref, u_ref,
    w_qv_e_ref, b_qv_ref, w_u_ref, b_u_ref, w_l_ref, b_l_ref,
    out_ref,
    x_acc, uqv_scr, k_scr, gate_scr,
):
    i = pl.program_id(0)
    tile_e = edges_ref.shape[0]
    B = u_ref.shape[0]
    hd = k_scr.shape[1]                # H * d_attn
    H = gate_scr.shape[1]
    d_attn = hd // H
    d_e = out_ref.shape[1]

    # ---- step 0: fused u-side projection (uQ | uV | scale*K | gate), cached in scratch
    @pl.when(i == 0)
    def _init():
        x_acc[...] = jnp.zeros_like(x_acc)
        u_proj = (jnp.dot(u_ref[...], w_u_ref[...], preferred_element_type=jnp.float32)
                  + b_u_ref[...])                               # (B, 3*H*d_attn + H)
        uqv_scr[...] = u_proj[:, : 2 * hd]                      # no bias/activation here
        kg = _leaky(u_proj[:, 2 * hd:])                         # K (scale folded) and gate
        k_scr[...] = kg[:, :hd]
        gate_scr[...] = kg[:, hd:]

    # ---- per-tile edge work
    edges = edges_ref[...]                                      # (tile_e, d_e)
    # Graph-membership masks from iota compares (no transposes, no gathers).
    mask_eb_f = (ebc_ref[...] ==
                 lax.broadcasted_iota(jnp.int32, (tile_e, B), 1)).astype(jnp.float32)
    mask_be = lax.broadcasted_iota(jnp.int32, (B, tile_e), 0) == ebr_ref[...]
    mask_be_f = mask_be.astype(jnp.float32)

    # Fused Q/V projection for all heads: concat-Linear split into edge part + u part,
    # the u[batch[s]] gather implemented as a one-hot matmul with the membership mask.
    qv = _leaky(
        jnp.dot(edges, w_qv_e_ref[...], preferred_element_type=jnp.float32)
        + jnp.dot(mask_eb_f, uqv_scr[...], preferred_element_type=jnp.float32)
        + b_qv_ref[...]
    )                                                            # (tile_e, 2*H*d_attn)

    k_all = k_scr[...]                                           # (B, H*d_attn), pre-scaled
    parts = []
    for h in range(H):                                           # static unroll over heads
        q_h = qv[:, h * d_attn:(h + 1) * d_attn]                 # (tile_e, d_attn)
        v_h = qv[:, hd + h * d_attn: hd + (h + 1) * d_attn]      # (tile_e, d_attn)
        k_h = k_all[:, h * d_attn:(h + 1) * d_attn]              # (B, d_attn)

        # Scores directly in (graphs x edges) layout; scale already folded into k.
        s_t = lax.dot_general(k_h, q_h, _NT, preferred_element_type=jnp.float32)  # (B, tile_e)
        s_t = jnp.where(mask_be, s_t, -1e30)
        m = jnp.max(s_t, axis=0, keepdims=True)                  # softmax over graphs/edge
        e = jnp.exp(s_t - m)
        attn_t = (e / jnp.sum(e, axis=0, keepdims=True)) * mask_be_f   # zeros padded edges
        parts.append(jnp.dot(attn_t, v_h, preferred_element_type=jnp.float32))    # (B, d_attn)

    x_acc[...] += jnp.concatenate(parts, axis=-1)                # (B, H*d_attn)

    # ---- last step: per-head output Linear (block-diagonal, one matmul) + gated sum
    @pl.when(i == pl.num_programs(0) - 1)
    def _finish():
        heads = _leaky(jnp.dot(x_acc[...], w_l_ref[...],
                               preferred_element_type=jnp.float32) + b_l_ref[...])  # (B, H*d_e)
        gates = gate_scr[...]                                    # (B, H)
        acc = jnp.zeros((B, d_e), jnp.float32)
        for h in range(H):
            acc = acc + gates[:, h:h + 1] * heads[:, h * d_e:(h + 1) * d_e]
        out_ref[...] = acc


def init_params(key, d_e, d_u, d_attn, num_heads):
    """torch-layout parameters (W: (out, in)), stacked over heads, torch Linear init."""
    def linear(k, fan_out, fan_in):
        kw, kb = jax.random.split(k)
        bound = 1.0 / (fan_in ** 0.5)
        w = jax.random.uniform(kw, (num_heads, fan_out, fan_in), jnp.float32, -bound, bound)
        b = jax.random.uniform(kb, (num_heads, fan_out), jnp.float32, -bound, bound)
        return w, b

    k1, k2, k3, k4, k5 = jax.random.split(key, 5)
    wq, bq = linear(k1, d_attn, d_e + d_u)
    wk, bk = linear(k2, d_attn, d_u)
    wv, bv = linear(k3, d_attn, d_e + d_u)
    wl, bl = linear(k4, d_e, d_attn)
    wg, bg = linear(k5, 1, d_u)
    return dict(wq=wq, bq=bq, wk=wk, bk=bk, wv=wv, bv=bv, wl=wl, bl=bl, wg=wg, bg=bg)


def prepare_kernel_params(p, d_e):
    """One-time host-side prep: split concat-Linear, pre-transpose to (in, out),
    fuse across heads and projections, fold the attention scale, block-diag Wl."""
    H, d_attn, _ = p["wq"].shape
    scale = 1.0 / (d_attn ** 0.5)

    def fuse(w):                       # (H, out, in) -> (in, H*out), head-major columns
        return jnp.transpose(w, (2, 0, 1)).reshape(w.shape[2], -1)

    wq_e, wq_u = p["wq"][:, :, :d_e], p["wq"][:, :, d_e:]
    wv_e, wv_u = p["wv"][:, :, :d_e], p["wv"][:, :, d_e:]

    # Edge-side fused projection (Q heads | V heads): (d_e, 2*H*d_attn).
    w_qv_e = jnp.concatenate([fuse(wq_e), fuse(wv_e)], axis=1)
    b_qv = jnp.concatenate([p["bq"].reshape(-1), p["bv"].reshape(-1)]).reshape(1, -1)

    # U-side fused projection (uQ | uV | scale*K | gate): (d_u, H*(3*d_attn+1)).
    w_u = jnp.concatenate([fuse(wq_u), fuse(wv_u), scale * fuse(p["wk"]), fuse(p["wg"])], axis=1)
    b_u = jnp.concatenate([jnp.zeros(2 * H * d_attn, jnp.float32),
                           scale * p["bk"].reshape(-1),
                           p["bg"].reshape(-1)]).reshape(1, -1)

    # Output Linear for all heads as one block-diagonal matmul: (H*d_attn, H*d_e).
    w_l = jax.scipy.linalg.block_diag(*[p["wl"][h].T for h in range(H)])
    b_l = p["bl"].reshape(1, -1)

    return dict(w_qv_e=w_qv_e, b_qv=b_qv, w_u=w_u, b_u=b_u, w_l=w_l, b_l=b_l,
                num_heads=H, d_attn=d_attn)


def edge_aggregate_global_forward(nodes, edges, edge_index, u, batch, kp, *, tile_e=128):
    """Pallas forward. nodes is unused by the module's forward (kept for signature parity)."""
    del nodes
    assert tile_e % 128 == 0
    E, d_e = edges.shape
    B, d_u = u.shape
    H, d_attn = kp["num_heads"], kp["d_attn"]

    # Data-dependent batch[s] gather kept in plain JAX (tiny); both layouts passed so the
    # kernel builds both membership masks with iota compares (no in-kernel transposes).
    eb = batch[edge_index[0]].astype(jnp.int32)

    n_tiles = max(1, -(-E // tile_e))
    e_pad = n_tiles * tile_e
    edges_f = edges.astype(jnp.float32)
    if e_pad != E:
        edges_f = jnp.pad(edges_f, ((0, e_pad - E), (0, 0)))
        eb = jnp.pad(eb, (0, e_pad - E), constant_values=-1)     # padded edges match no graph
    eb_col = eb.reshape(e_pad, 1)
    eb_row = eb.reshape(1, e_pad)

    grid_spec = pltpu.PrefetchScalarGridSpec(
        num_scalar_prefetch=0,
        grid=(n_tiles,),
        in_specs=[
            pl.BlockSpec((tile_e, d_e), lambda i: (i, 0)),       # edges
            pl.BlockSpec((tile_e, 1), lambda i: (i, 0)),         # eb (column layout)
            pl.BlockSpec((1, tile_e), lambda i: (0, i)),         # eb (row layout)
            pl.BlockSpec((B, d_u), lambda i: (0, 0)),            # u (resident)
            pl.BlockSpec(kp["w_qv_e"].shape, lambda i: (0, 0)),
            pl.BlockSpec(kp["b_qv"].shape, lambda i: (0, 0)),
            pl.BlockSpec(kp["w_u"].shape, lambda i: (0, 0)),
            pl.BlockSpec(kp["b_u"].shape, lambda i: (0, 0)),
            pl.BlockSpec(kp["w_l"].shape, lambda i: (0, 0)),
            pl.BlockSpec(kp["b_l"].shape, lambda i: (0, 0)),
        ],
        out_specs=pl.BlockSpec((B, d_e), lambda i: (0, 0)),
        scratch_shapes=[
            pltpu.VMEM((B, H * d_attn), jnp.float32),            # x accumulator
            pltpu.VMEM((B, 2 * H * d_attn), jnp.float32),        # cached uQ|uV projections
            pltpu.VMEM((B, H * d_attn), jnp.float32),            # cached (scaled) keys
            pltpu.VMEM((B, H), jnp.float32),                     # cached gates
        ],
    )
    return pl.pallas_call(
        edge_aggregate_global_kernel,
        out_shape=jax.ShapeDtypeStruct((B, d_e), jnp.float32),
        grid_spec=grid_spec,
        compiler_params=pltpu.CompilerParams(dimension_semantics=("arbitrary",)),
    )(edges_f, eb_col, eb_row, u.astype(jnp.float32),
      kp["w_qv_e"], kp["b_qv"], kp["w_u"], kp["b_u"], kp["w_l"], kp["b_l"])


def edge_aggregate_global_reference(nodes, edges, edge_index, u, batch, p):
    """Pure-JAX mirror of the PyTorch forward, for correctness checking."""
    del nodes

    def leaky(x):
        return jnp.where(x >= 0, x, _NEG_SLOPE * x)

    s = edge_index[0]
    eb = batch[s]
    B = u.shape[0]
    H, d_attn, _ = p["wq"].shape
    mask = eb[:, None] == jnp.arange(B)[None, :]                  # (E, B)
    cat = jnp.concatenate([edges, u[eb]], axis=1)                 # (E, d_e + d_u)

    heads, gates = [], []
    for h in range(H):
        q = leaky(cat @ p["wq"][h].T + p["bq"][h])
        k = leaky(u @ p["wk"][h].T + p["bk"][h])
        v = leaky(cat @ p["wv"][h].T + p["bv"][h])
        scores = (q @ k.T) / (d_attn ** 0.5)
        scores = jnp.where(mask, scores, -jnp.inf)
        attn = jax.nn.softmax(scores, axis=-1)                    # (E, B)
        x = attn.T @ v                                            # (B, d_attn)
        heads.append(leaky(x @ p["wl"][h].T + p["bl"][h]))        # (B, d_e)
        gates.append(leaky(u @ p["wg"][h].T + p["bg"][h]).squeeze(-1))  # (B,)
    return jnp.einsum("ijk,ij->jk", jnp.stack(heads), jnp.stack(gates))


if __name__ == "__main__":
    d_v, d_e, d_u, d_attn, num_heads = 8, 16, 8, 32, 2
    n_nodes, n_edges, n_graphs = 24, 200, 4        # E=200 -> padded to 256 = 2 edge tiles

    key = jax.random.PRNGKey(0)
    k_n, k_e, k_u, k_s, k_r, k_p = jax.random.split(key, 6)

    nodes = jax.random.normal(k_n, (n_nodes, d_v), jnp.float32)
    edges = jax.random.normal(k_e, (n_edges, d_e), jnp.float32)
    u = jax.random.normal(k_u, (n_graphs, d_u), jnp.float32)
    batch = jnp.repeat(jnp.arange(n_graphs, dtype=jnp.int32), n_nodes // n_graphs)
    s = jax.random.randint(k_s, (n_edges,), 0, n_nodes, jnp.int32)
    r = jax.random.randint(k_r, (n_edges,), 0, n_nodes, jnp.int32)
    edge_index = jnp.stack([s, r])

    params = init_params(k_p, d_e, d_u, d_attn, num_heads)
    kparams = prepare_kernel_params(params, d_e)   # one-time setup, not per-call

    out = edge_aggregate_global_forward(nodes, edges, edge_index, u, batch, kparams)
    out = jax.block_until_ready(out)

    ref = edge_aggregate_global_reference(nodes, edges, edge_index, u, batch, params)
    assert out.shape == (n_graphs, d_e)
    assert jnp.allclose(out, ref, rtol=1e-4, atol=1e-4), (out, ref)

    print("KERNEL_OK")
</pallas_src>

<mosaic_0001>
module attributes {stable_mosaic.version = 11 : i64} {
  func.func @edge_aggregate_global_kernel(%arg0: i32, %arg1: memref<128x16xf32, #tpu.memory_space<vmem>>, %arg2: memref<128x1xi32, #tpu.memory_space<vmem>>, %arg3: memref<1x128xi32, #tpu.memory_space<vmem>>, %arg4: memref<4x8xf32, #tpu.memory_space<vmem>>, %arg5: memref<16x128xf32, #tpu.memory_space<vmem>>, %arg6: memref<1x128xf32, #tpu.memory_space<vmem>>, %arg7: memref<8x194xf32, #tpu.memory_space<vmem>>, %arg8: memref<1x194xf32, #tpu.memory_space<vmem>>, %arg9: memref<64x32xf32, #tpu.memory_space<vmem>>, %arg10: memref<1x32xf32, #tpu.memory_space<vmem>>, %arg11: memref<4x16xf32, #tpu.memory_space<vmem>>, %arg12: memref<4x64xf32, #tpu.memory_space<vmem>>, %arg13: memref<4x128xf32, #tpu.memory_space<vmem>>, %arg14: memref<4x64xf32, #tpu.memory_space<vmem>>, %arg15: memref<4x2xf32, #tpu.memory_space<vmem>>) attributes {dimension_semantics = [#tpu.dimension_semantics<arbitrary>], iteration_bounds = array<i64: 2>, scalar_prefetch = 0 : i64, scratch_operands = 4 : i64, tpu.core_type = #tpu.core_type<tc>, window_params = [{transform_indices = @transform_0, window_bounds = array<i64: 128, 16>}, {transform_indices = @transform_1, window_bounds = array<i64: 128, 1>}, {transform_indices = @transform_2, window_bounds = array<i64: 1, 128>}, {pipeline_mode = #tpu.pipeline_mode<synchronous>, transform_indices = @transform_3, window_bounds = array<i64: 4, 8>}, {pipeline_mode = #tpu.pipeline_mode<synchronous>, transform_indices = @transform_4, window_bounds = array<i64: 16, 128>}, {pipeline_mode = #tpu.pipeline_mode<synchronous>, transform_indices = @transform_5, window_bounds = array<i64: 1, 128>}, {pipeline_mode = #tpu.pipeline_mode<synchronous>, transform_indices = @transform_6, window_bounds = array<i64: 8, 194>}, {pipeline_mode = #tpu.pipeline_mode<synchronous>, transform_indices = @transform_7, window_bounds = array<i64: 1, 194>}, {pipeline_mode = #tpu.pipeline_mode<synchronous>, transform_indices = @transform_8, window_bounds = array<i64: 64, 32>}, {pipeline_mode = #tpu.pipeline_mode<synchronous>, transform_indices = @transform_9, window_bounds = array<i64: 1, 32>}, {pipeline_mode = #tpu.pipeline_mode<synchronous>, transform_indices = @transform_10, window_bounds = array<i64: 4, 16>}]} {
    %c0_i32 = arith.constant 0 : i32
    %0 = arith.cmpi eq, %arg0, %c0_i32 : i32
    %1 = arith.extui %0 : i1 to i32
    %c0_i32_0 = arith.constant 0 : i32
    %2 = arith.cmpi ne, %1, %c0_i32_0 : i32
    scf.if %2 {
      %cst_31 = arith.constant 0.000000e+00 : f32
      %69 = vector.broadcast %cst_31 : f32 to vector<4x64xf32>
      %c0_32 = arith.constant 0 : index
      %c0_33 = arith.constant 0 : index
      %70 = vector.load %arg12[%c0_32, %c0_33] : memref<4x64xf32, #tpu.memory_space<vmem>>, vector<4x64xf32>
      tpu.vector_store %arg12[%c0_32, %c0_33], %69 {strides = array<i32>} : memref<4x64xf32, #tpu.memory_space<vmem>>, vector<4x64xf32>,
      %c0_34 = arith.constant 0 : index
      %c0_35 = arith.constant 0 : index
      %71 = vector.load %arg4[%c0_34, %c0_35] : memref<4x8xf32, #tpu.memory_space<vmem>>, vector<4x8xf32>
      %c0_36 = arith.constant 0 : index
      %c0_37 = arith.constant 0 : index
      %72 = vector.load %arg7[%c0_36, %c0_37] : memref<8x194xf32, #tpu.memory_space<vmem>>, vector<8x194xf32>
      %cst_38 = arith.constant dense<0.000000e+00> : vector<4x194xf32>
      %73 = tpu.matmul %71, %72, %cst_38 {dimension_numbers = #tpu.dot_dimension_numbers<[1], [0], [0], [1], [0, 0, 1, 1], [], []>} : vector<4x8xf32>, vector<8x194xf32>, vector<4x194xf32> -> vector<4x194xf32>
      %c0_39 = arith.constant 0 : index
      %c0_40 = arith.constant 0 : index
      %74 = vector.load %arg8[%c0_39, %c0_40] : memref<1x194xf32, #tpu.memory_space<vmem>>, vector<1x194xf32>
      %75 = vector.broadcast %74 : vector<1x194xf32> to vector<4x194xf32>
      %76 = arith.addf %73, %75 : vector<4x194xf32>
      %77 = vector.extract_strided_slice %76 {offsets = [0, 0], sizes = [4, 128], strides = [1, 1]} : vector<4x194xf32> to vector<4x128xf32>
      %c0_41 = arith.constant 0 : index
      %c0_42 = arith.constant 0 : index
      %78 = vector.load %arg13[%c0_41, %c0_42] : memref<4x128xf32, #tpu.memory_space<vmem>>, vector<4x128xf32>
      tpu.vector_store %arg13[%c0_41, %c0_42], %77 {strides = array<i32>} : memref<4x128xf32, #tpu.memory_space<vmem>>, vector<4x128xf32>,
      %79 = vector.extract_strided_slice %76 {offsets = [0, 128], sizes = [4, 66], strides = [1, 1]} : vector<4x194xf32> to vector<4x66xf32>
      %cst_43 = arith.constant 0.00999999977 : f32
      %80 = vector.broadcast %cst_43 : f32 to vector<4x66xf32>
      %81 = arith.mulf %80, %79 : vector<4x66xf32>
      %82 = arith.maximumf %79, %81 : vector<4x66xf32>
      %83 = vector.extract_strided_slice %82 {offsets = [0, 0], sizes = [4, 64], strides = [1, 1]} : vector<4x66xf32> to vector<4x64xf32>
      %c0_44 = arith.constant 0 : index
      %c0_45 = arith.constant 0 : index
      %84 = vector.load %arg14[%c0_44, %c0_45] : memref<4x64xf32, #tpu.memory_space<vmem>>, vector<4x64xf32>
      tpu.vector_store %arg14[%c0_44, %c0_45], %83 {strides = array<i32>} : memref<4x64xf32, #tpu.memory_space<vmem>>, vector<4x64xf32>,
      %85 = vector.extract_strided_slice %82 {offsets = [0, 64], sizes = [4, 2], strides = [1, 1]} : vector<4x66xf32> to vector<4x2xf32>
      %c0_46 = arith.constant 0 : index
      %c0_47 = arith.constant 0 : index
      %86 = vector.load %arg15[%c0_46, %c0_47] : memref<4x2xf32, #tpu.memory_space<vmem>>, vector<4x2xf32>
      tpu.vector_store %arg15[%c0_46, %c0_47], %85 {strides = array<i32>} : memref<4x2xf32, #tpu.memory_space<vmem>>, vector<4x2xf32>,
    } else {
    }
    %c0 = arith.constant 0 : index
    %c0_1 = arith.constant 0 : index
    %3 = vector.load %arg1[%c0, %c0_1] : memref<128x16xf32, #tpu.memory_space<vmem>>, vector<128x16xf32>
    %c0_2 = arith.constant 0 : index
    %c0_3 = arith.constant 0 : index
    %4 = vector.load %arg2[%c0_2, %c0_3] : memref<128x1xi32, #tpu.memory_space<vmem>>, vector<128x1xi32>
    %5 = tpu.iota {dimensions = array<i32: 1>} : vector<128x4xi32>
    %6 = vector.broadcast %4 : vector<128x1xi32> to vector<128x4xi32>
    %7 = arith.cmpi eq, %6, %5 : vector<128x4xi32>
    %8 = arith.extui %7 : vector<128x4xi1> to vector<128x4xi32>
    %9 = arith.sitofp %8 : vector<128x4xi32> to vector<128x4xf32>
    %10 = tpu.iota {dimensions = array<i32: 0>} : vector<4x128xi32>
    %c0_4 = arith.constant 0 : index
    %c0_5 = arith.constant 0 : index
    %11 = vector.load %arg3[%c0_4, %c0_5] : memref<1x128xi32, #tpu.memory_space<vmem>>, vector<1x128xi32>
    %12 = vector.broadcast %11 : vector<1x128xi32> to vector<4x128xi32>
    %13 = arith.cmpi eq, %10, %12 : vector<4x128xi32>
    %14 = arith.extui %13 : vector<4x128xi1> to vector<4x128xi32>
    %15 = arith.sitofp %14 : vector<4x128xi32> to vector<4x128xf32>
    %c0_6 = arith.constant 0 : index
    %c0_7 = arith.constant 0 : index
    %16 = vector.load %arg5[%c0_6, %c0_7] : memref<16x128xf32, #tpu.memory_space<vmem>>, vector<16x128xf32>
    %cst = arith.constant dense<0.000000e+00> : vector<128x128xf32>
    %17 = tpu.matmul %3, %16, %cst {dimension_numbers = #tpu.dot_dimension_numbers<[1], [0], [0], [1], [0, 0, 1, 1], [], []>} : vector<128x16xf32>, vector<16x128xf32>, vector<128x128xf32> -> vector<128x128xf32>
    %c0_8 = arith.constant 0 : index
    %c0_9 = arith.constant 0 : index
    %18 = vector.load %arg13[%c0_8, %c0_9] : memref<4x128xf32, #tpu.memory_space<vmem>>, vector<4x128xf32>
    %cst_10 = arith.constant dense<0.000000e+00> : vector<128x128xf32>
    %19 = tpu.matmul %9, %18, %cst_10 {dimension_numbers = #tpu.dot_dimension_numbers<[1], [0], [0], [1], [0, 0, 1, 1], [], []>} : vector<128x4xf32>, vector<4x128xf32>, vector<128x128xf32> -> vector<128x128xf32>
    %20 = arith.addf %17, %19 : vector<128x128xf32>
    %c0_11 = arith.constant 0 : index
    %c0_12 = arith.constant 0 : index
    %21 = vector.load %arg6[%c0_11, %c0_12] : memref<1x128xf32, #tpu.memory_space<vmem>>, vector<1x128xf32>
    %22 = vector.broadcast %21 : vector<1x128xf32> to vector<128x128xf32>
    %23 = arith.addf %20, %22 : vector<128x128xf32>
    %cst_13 = arith.constant 0.00999999977 : f32
    %24 = vector.broadcast %cst_13 : f32 to vector<128x128xf32>
    %25 = arith.mulf %24, %23 : vector<128x128xf32>
    %26 = arith.maximumf %23, %25 : vector<128x128xf32>
    %c0_14 = arith.constant 0 : index
    %c0_15 = arith.constant 0 : index
    %27 = vector.load %arg14[%c0_14, %c0_15] : memref<4x64xf32, #tpu.memory_space<vmem>>, vector<4x64xf32>
    %28 = vector.extract_strided_slice %26 {offsets = [0, 0], sizes = [128, 32], strides = [1, 1]} : vector<128x128xf32> to vector<128x32xf32>
    %29 = vector.extract_strided_slice %26 {offsets = [0, 64], sizes = [128, 32], strides = [1, 1]} : vector<128x128xf32> to vector<128x32xf32>
    %30 = vector.extract_strided_slice %27 {offsets = [0, 0], sizes = [4, 32], strides = [1, 1]} : vector<4x64xf32> to vector<4x32xf32>
    %cst_16 = arith.constant dense<0.000000e+00> : vector<4x128xf32>
    %31 = tpu.matmul %30, %28, %cst_16 {dimension_numbers = #tpu.dot_dimension_numbers<[1], [1], [0], [0], [0, 0, 1, 0], [], []>} : vector<4x32xf32>, vector<128x32xf32>, vector<4x128xf32> -> vector<4x128xf32>
    %cst_17 = arith.constant -1.000000e+30 : f32
    %32 = vector.broadcast %cst_17 : f32 to vector<4x128xf32>
    %33 = arith.select %13, %31, %32 : vector<4x128xi1>, vector<4x128xf32>
    %cst_18 = arith.constant dense<0xFF800000> : vector<128xf32>
    %34 = vector.multi_reduction <maximumf>, %33, %cst_18 [0] : vector<4x128xf32> to vector<128xf32>
    %35 = vector.shape_cast %34 : vector<128xf32> to vector<1x128xf32>
    %36 = vector.broadcast %35 : vector<1x128xf32> to vector<4x128xf32>
    %37 = arith.subf %33, %36 : vector<4x128xf32>
    %38 = math.exp %37 : vector<4x128xf32>
    %cst_19 = arith.constant dense<0.000000e+00> : vector<128xf32>
    %39 = vector.multi_reduction <add>, %38, %cst_19 [0] : vector<4x128xf32> to vector<128xf32>
    %40 = vector.shape_cast %39 : vector<128xf32> to vector<1x128xf32>
    %41 = vector.broadcast %40 : vector<1x128xf32> to vector<4x128xf32>
    %42 = arith.divf %38, %41 : vector<4x128xf32>
    %43 = arith.mulf %42, %15 : vector<4x128xf32>
    %cst_20 = arith.constant dense<0.000000e+00> : vector<4x32xf32>
    %44 = tpu.matmul %43, %29, %cst_20 {dimension_numbers = #tpu.dot_dimension_numbers<[1], [0], [0], [1], [0, 0, 1, 1], [], []>} : vector<4x128xf32>, vector<128x32xf32>, vector<4x32xf32> -> vector<4x32xf32>
    %45 = vector.extract_strided_slice %26 {offsets = [0, 32], sizes = [128, 32], strides = [1, 1]} : vector<128x128xf32> to vector<128x32xf32>
    %46 = vector.extract_strided_slice %26 {offsets = [0, 96], sizes = [128, 32], strides = [1, 1]} : vector<128x128xf32> to vector<128x32xf32>
    %47 = vector.extract_strided_slice %27 {offsets = [0, 32], sizes = [4, 32], strides = [1, 1]} : vector<4x64xf32> to vector<4x32xf32>
    %cst_21 = arith.constant dense<0.000000e+00> : vector<4x128xf32>
    %48 = tpu.matmul %47, %45, %cst_21 {dimension_numbers = #tpu.dot_dimension_numbers<[1], [1], [0], [0], [0, 0, 1, 0], [], []>} : vector<4x32xf32>, vector<128x32xf32>, vector<4x128xf32> -> vector<4x128xf32>
    %cst_22 = arith.constant -1.000000e+30 : f32
    %49 = vector.broadcast %cst_22 : f32 to vector<4x128xf32>
    %50 = arith.select %13, %48, %49 : vector<4x128xi1>, vector<4x128xf32>
    %cst_23 = arith.constant dense<0xFF800000> : vector<128xf32>
    %51 = vector.multi_reduction <maximumf>, %50, %cst_23 [0] : vector<4x128xf32> to vector<128xf32>
    %52 = vector.shape_cast %51 : vector<128xf32> to vector<1x128xf32>
    %53 = vector.broadcast %52 : vector<1x128xf32> to vector<4x128xf32>
    %54 = arith.subf %50, %53 : vector<4x128xf32>
    %55 = math.exp %54 : vector<4x128xf32>
    %cst_24 = arith.constant dense<0.000000e+00> : vector<128xf32>
    %56 = vector.multi_reduction <add>, %55, %cst_24 [0] : vector<4x128xf32> to vector<128xf32>
    %57 = vector.shape_cast %56 : vector<128xf32> to vector<1x128xf32>
    %58 = vector.broadcast %57 : vector<1x128xf32> to vector<4x128xf32>
    %59 = arith.divf %55, %58 : vector<4x128xf32>
    %60 = arith.mulf %59, %15 : vector<4x128xf32>
    %cst_25 = arith.constant dense<0.000000e+00> : vector<4x32xf32>
    %61 = tpu.matmul %60, %46, %cst_25 {dimension_numbers = #tpu.dot_dimension_numbers<[1], [0], [0], [1], [0, 0, 1, 1], [], []>} : vector<4x128xf32>, vector<128x32xf32>, vector<4x32xf32> -> vector<4x32xf32>
    %c0_26 = arith.constant 0 : index
    %c0_27 = arith.constant 0 : index
    %62 = vector.load %arg12[%c0_26, %c0_27] : memref<4x64xf32, #tpu.memory_space<vmem>>, vector<4x64xf32>
    %63 = tpu.concatenate %44, %61 in 1 : vector<4x32xf32>, vector<4x32xf32> -> vector<4x64xf32>
    %64 = arith.addf %62, %63 : vector<4x64xf32>
    %c0_28 = arith.constant 0 : index
    %c0_29 = arith.constant 0 : index
    %65 = vector.load %arg12[%c0_28, %c0_29] : memref<4x64xf32, #tpu.memory_space<vmem>>, vector<4x64xf32>
    tpu.vector_store %arg12[%c0_28, %c0_29], %64 {strides = array<i32>} : memref<4x64xf32, #tpu.memory_space<vmem>>, vector<4x64xf32>,
    %c1_i32 = arith.constant 1 : i32
    %66 = arith.cmpi eq, %arg0, %c1_i32 : i32
    %67 = arith.extui %66 : i1 to i32
    %c0_i32_30 = arith.constant 0 : i32
    %68 = arith.cmpi ne, %67, %c0_i32_30 : i32
    scf.if %68 {
      %c0_31 = arith.constant 0 : index
      %c0_32 = arith.constant 0 : index
      %69 = vector.load %arg12[%c0_31, %c0_32] : memref<4x64xf32, #tpu.memory_space<vmem>>, vector<4x64xf32>
      %c0_33 = arith.constant 0 : index
      %c0_34 = arith.constant 0 : index
      %70 = vector.load %arg9[%c0_33, %c0_34] : memref<64x32xf32, #tpu.memory_space<vmem>>, vector<64x32xf32>
      %cst_35 = arith.constant dense<0.000000e+00> : vector<4x32xf32>
      %71 = tpu.matmul %69, %70, %cst_35 {dimension_numbers = #tpu.dot_dimension_numbers<[1], [0], [0], [1], [0, 0, 1, 1], [], []>} : vector<4x64xf32>, vector<64x32xf32>, vector<4x32xf32> -> vector<4x32xf32>
      %c0_36 = arith.constant 0 : index
      %c0_37 = arith.constant 0 : index
      %72 = vector.load %arg10[%c0_36, %c0_37] : memref<1x32xf32, #tpu.memory_space<vmem>>, vector<1x32xf32>
      %73 = vector.broadcast %72 : vector<1x32xf32> to vector<4x32xf32>
      %74 = arith.addf %71, %73 : vector<4x32xf32>
      %cst_38 = arith.constant 0.00999999977 : f32
      %75 = vector.broadcast %cst_38 : f32 to vector<4x32xf32>
      %76 = arith.mulf %75, %74 : vector<4x32xf32>
      %77 = arith.maximumf %74, %76 : vector<4x32xf32>
      %c0_39 = arith.constant 0 : index
      %c0_40 = arith.constant 0 : index
      %78 = vector.load %arg15[%c0_39, %c0_40] : memref<4x2xf32, #tpu.memory_space<vmem>>, vector<4x2xf32>
      %cst_41 = arith.constant 0.000000e+00 : f32
      %79 = vector.broadcast %cst_41 : f32 to vector<4x16xf32>
      %80 = vector.extract_strided_slice %78 {offsets = [0, 0], sizes = [4, 1], strides = [1, 1]} : vector<4x2xf32> to vector<4x1xf32>
      %81 = vector.extract_strided_slice %77 {offsets = [0, 0], sizes = [4, 16], strides = [1, 1]} : vector<4x32xf32> to vector<4x16xf32>
      %82 = vector.broadcast %80 : vector<4x1xf32> to vector<4x16xf32>
      %83 = arith.mulf %82, %81 : vector<4x16xf32>
      %84 = arith.addf %79, %83 : vector<4x16xf32>
      %85 = vector.extract_strided_slice %78 {offsets = [0, 1], sizes = [4, 1], strides = [1, 1]} : vector<4x2xf32> to vector<4x1xf32>
      %86 = vector.extract_strided_slice %77 {offsets = [0, 16], sizes = [4, 16], strides = [1, 1]} : vector<4x32xf32> to vector<4x16xf32>
      %87 = vector.broadcast %85 : vector<4x1xf32> to vector<4x16xf32>
      %88 = arith.mulf %87, %86 : vector<4x16xf32>
      %89 = arith.addf %84, %88 : vector<4x16xf32>
      %c0_42 = arith.constant 0 : index
      %c0_43 = arith.constant 0 : index
      %90 = vector.load %arg11[%c0_42, %c0_43] : memref<4x16xf32, #tpu.memory_space<vmem>>, vector<4x16xf32>
      tpu.vector_store %arg11[%c0_42, %c0_43], %89 {strides = array<i32>} : memref<4x16xf32, #tpu.memory_space<vmem>>, vector<4x16xf32>,
    } else {
    }
    return
  }
  func.func @transform_0(%arg0: i32) -> (i32, i32) {
    %c0_i32 = arith.constant 0 : i32
    %c0_i32_0 = arith.constant 0 : i32
    return %arg0, %c0_i32 : i32, i32
  }
  func.func @transform_1(%arg0: i32) -> (i32, i32) {
    %c0_i32 = arith.constant 0 : i32
    %c0_i32_0 = arith.constant 0 : i32
    return %arg0, %c0_i32 : i32, i32
  }
  func.func @transform_2(%arg0: i32) -> (i32, i32) {
    %c0_i32 = arith.constant 0 : i32
    %c0_i32_0 = arith.constant 0 : i32
    return %c0_i32, %arg0 : i32, i32
  }
  func.func @transform_3(%arg0: i32) -> (i32, i32) {
    %c0_i32 = arith.constant 0 : i32
    %c0_i32_0 = arith.constant 0 : i32
    %c0_i32_1 = arith.constant 0 : i32
    return %c0_i32, %c0_i32_0 : i32, i32
  }
  func.func @transform_4(%arg0: i32) -> (i32, i32) {
    %c0_i32 = arith.constant 0 : i32
    %c0_i32_0 = arith.constant 0 : i32
    %c0_i32_1 = arith.constant 0 : i32
    return %c0_i32, %c0_i32_0 : i32, i32
  }
  func.func @transform_5(%arg0: i32) -> (i32, i32) {
    %c0_i32 = arith.constant 0 : i32
    %c0_i32_0 = arith.constant 0 : i32
    %c0_i32_1 = arith.constant 0 : i32
    return %c0_i32, %c0_i32_0 : i32, i32
  }
  func.func @transform_6(%arg0: i32) -> (i32, i32) {
    %c0_i32 = arith.constant 0 : i32
    %c0_i32_0 = arith.constant 0 : i32
    %c0_i32_1 = arith.constant 0 : i32
    return %c0_i32, %c0_i32_0 : i32, i32
  }
  func.func @transform_7(%arg0: i32) -> (i32, i32) {
    %c0_i32 = arith.constant 0 : i32
    %c0_i32_0 = arith.constant 0 : i32
    %c0_i32_1 = arith.constant 0 : i32
    return %c0_i32, %c0_i32_0 : i32, i32
  }
  func.func @transform_8(%arg0: i32) -> (i32, i32) {
    %c0_i32 = arith.constant 0 : i32
    %c0_i32_0 = arith.constant 0 : i32
    %c0_i32_1 = arith.constant 0 : i32
    return %c0_i32, %c0_i32_0 : i32, i32
  }
  func.func @transform_9(%arg0: i32) -> (i32, i32) {
    %c0_i32 = arith.constant 0 : i32
    %c0_i32_0 = arith.constant 0 : i32
    %c0_i32_1 = arith.constant 0 : i32
    return %c0_i32, %c0_i32_0 : i32, i32
  }
  func.func @transform_10(%arg0: i32) -> (i32, i32) {
    %c0_i32 = arith.constant 0 : i32
    %c0_i32_0 = arith.constant 0 : i32
    %c0_i32_1 = arith.constant 0 : i32
    return %c0_i32, %c0_i32_0 : i32, i32
  }
}

</mosaic_0001>

<bundles_post_ra>
// kernel: tpu_custom_call.1
= control target key start
LH: loop header
LB: loop body
LE: loop exit
PB: predicated region body
PF: predicated region fallthrough
CT: control target
= control target key end

     0   :  { %15 = vsyncpa [#allocation7], 0  ;;  %s2655_s13 = smov 0   ;;  %s3033_s0 = inlined_call_operand.vmem [shape: f32[256,16], index: 0, kind: input, shape index: {}]   ;;  %s3034_s1 = inlined_call_operand.vmem [shape: s32[256,1], index: 1, kind: input, shape index: {}]   ;;  %s3035_s2 = inlined_call_operand.vmem [shape: s32[1,256], index: 2, kind: input, shape index: {}]   ;;  %s3036_s3 = inlined_call_operand.vmem [shape: f32[4,8], index: 3, kind: input, shape index: {}]   ;;  %s3037_s4 = inlined_call_operand.vmem [shape: f32[16,128], index: 4, kind: input, shape index: {}]   ;;  %s3038_s5 = inlined_call_operand.vmem [shape: f32[1,128], index: 5, kind: input, shape index: {}]   ;;  %s3039_s6 = inlined_call_operand.vmem [shape: f32[8,194], index: 6, kind: input, shape index: {}]   ;;  %s3040_s7 = inlined_call_operand.vmem [shape: f32[1,194], index: 7, kind: input, shape index: {}]   ;;  %s3041_s8 = inlined_call_operand.vmem [shape: f32[64,32], index: 8, kind: input, shape index: {}]   ;;  %s3042_s9 = inlined_call_operand.vmem [shape: f32[1,32], index: 9, kind: input, shape index: {}]   ;;  %s3043_s10 = inlined_call_operand.hbm [shape: f32[4,16], index: 10, kind: output, shape index: {}]  }
   0x1 LB: > { %s2661_s14 = sadd.s32 4294967295, %s2582_s13   ;;  %p1814_p0 = scmp.ge.s32.totalorder %s2582_s13, 1  ;;  %s2582_s13 = sphi %s2655_s13, %s21_s13  }
   0x2   : > { %p328_p1 = scmp.lt.s32.totalorder %s2582_s13, 3 }
   0x4   : > { %p329_p2 = pnand %p1814_p0, %p328_p1 }
   0x5   : > { %s1815_s15 = sshll.u32 (!%p329_p2), %s2661_s14, 4  ;;  %p381_p3 = scmp.lt.s32.totalorder (!%p329_p2), %s2661_s14, 1 }
   0x6   : > { %332 = sbr.rel (%p329_p2) target bundleno = 1894 (0x766), region = 60  ;;  %p370_p4 = scmp.lt.s32.totalorder (!%p329_p2), %s1815_s15, 31 }
   0x7   : > { %p1819_p5 = scmp.ne.s32.totalorder (!%p329_p2), %s2661_s14, 0 }
   0xd   : > { %s2668_s16 = scalar_select %p381_p3, %s2661_s14, 1 }
   0xe   : > { %s3047_s15 = smov (!%p370_p4, %s1815_s15), 31  ;;  %387 = sbr.rel (%p1819_p5) target bundleno = 353 (0x161), region = 64 }
   0xf   : > { %s383_s19 = scalar_lea.vmem %s3035_s2, %s2668_s16  ;;  %s1816_s20 = sshll.u32 %s3047_s15, 3  ;;  %v392_v0 = vld [vmem:[%s3039_s6 + $0x8] sm:$0xff] (!%p1819_p5)  ;;  %v391_v1 = vld [vmem:[%s3039_s6] sm:$0xff] (!%p1819_p5)  ;;  %vm388_vm0 = vcmask (!%p1819_p5), 519168   ;;  %v2584_v3 = vmov (!%p1819_p5), 0.0   ;;  %vm405_vm1 = vcmask (!%p1819_p5), 64512   ;;  %v395_v4 = vlaneseq (!%p1819_p5) }
  0x10   : > { %s2677_s23 = scalar_lea.vmem %s3033_s0, %s1816_s20  ;;  %s2682_s26 = scalar_lea.vmem %s3034_s1, %s1816_s20  ;;  %v390_v2 = vld [vmem:[%s3036_s3] sm:$0xf] (!%p1819_p5)  ;;  %409 = vmatprep.subr.mxu0 (!%p1819_p5), %v392_v0  ;;  %389 = vst.msk [vmem:[#allocation2] sm:$0xf] (!%p1819_p5), %vm388_vm0, %v2584_v3  ;;  %473 = vmatprep.mubr.f32.mxu0 (!%p1819_p5), %v2584_v3  ;;  %vm488_vm2 = vcmask (!%p1819_p5), 11264  }
  0x11   : > { %410 = vmatpush1.msra.mxu0 (!%p1819_p5), %v391_v1  ;;  %v396_v5 = vshrl.u32 (!%p1819_p5), %v395_v4, 7  ;;  %v393_v7 = vld [vmem:[%s3040_s7] sm:$0x3] (!%p1819_p5)  ;;  %s2585_s18 = smov (!%p1819_p5), 64  }
  0x12   : > { %1820 = vmatmul.mubr.msk.f32.vlgmr.msra.gmra.mrb[0].mxu0 (!%p1819_p5), %vm405_vm1, %v390_v2 }
  0x13   : > { %v397_v6 = vsub.s32 (!%p1819_p5), 0, %v396_v5  ;;  %v401_v8 = vsub.s32 (!%p1819_p5), 1, %v396_v5 }
  0x15   : > { %v398_v9 = vrot.slane %v393_v7, %v397_v6  ;;  %v402_v10 = vrot.slane %v393_v7, %v401_v8 }
  0xe5   : > { %v475_v11 = vpop.f32.mrb[0].mxu0 }
  0xe6   : > { %v476_v12 = vadd.f32 %v475_v11, %v398_v9  ;;  %v477_v13 = vpop.f32.mrb[1].mxu0 }
  0xe7   : > { %v478_v14 = vadd.f32 %v477_v13, %v402_v10 }
  0xe8   : > { %480 = vst [vmem:[#allocation3] sm:$0xf] %v476_v12 }
  0xe9   : > { %v481_v15 = vmul.f32 0.01, %v478_v14 }
  0xeb   : > { %v482_v16 = vmax.f32 %v478_v14, %v481_v15 }
  0xed   : > { %483 = vst.msk [vmem:[#allocation4] sm:$0xf] %vm388_vm0, %v482_v16  ;;  %485 = vrot.lane.b32.xlu0 %v482_v16, %s2585_s18 }
 0x15f   : > { %v486_v17 = vpop.permute.xlu0 %485 }
 0x160   : > { %489 = vst.msk [vmem:[#allocation5] sm:$0xf] %vm488_vm2, %v486_v17 }
 0x161 PF: > { %v508_v18 = vld [vmem:[%s2682_s26 + $0x10] sm:$0xff]  ;;  %v506_v19 = vld [vmem:[%s2682_s26] sm:$0xff]  ;;  %v2586_v20 = vmov 0   ;;  %v509_v21 = vld [vmem:[%s2682_s26 + $0x18] sm:$0xff]  ;;  %vm682_vm3 = vcmask 1043456   ;;  %v522_v39 = vlaneseq  ;;  %vm633_vm4 = vcmask 31744  }
 0x162   : > { %2414 = vset.pattern.permute.xlu1 %v2586_v20  ;;  %2413 = vset.pattern.permute.xlu0 %v2586_v20  ;;  %v507_v22 = vld [vmem:[%s2682_s26 + $0x8] sm:$0xff]  ;;  %v632_v23 = vld [vmem:[#allocation3] sm:$0xf]  ;;  %v513_v29 = vld [vmem:[%s2682_s26 + $0x38] sm:$0xff]  ;;  %v2587_v43 = vmov 0.0   ;;  %s2591_s27 = smov 64  }
 0x163   : > { %531 = vperm.xlu1 %2414, %v508_v18   ;;  %525 = vperm.xlu0 %2413, %v506_v19   ;;  %v511_v24 = vld [vmem:[%s2682_s26 + $0x28] sm:$0xff]  ;;  %v510_v25 = vld [vmem:[%s2682_s26 + $0x20] sm:$0xff]  ;;  %v512_v30 = vld [vmem:[%s2682_s26 + $0x30] sm:$0xff]  ;;  %v2724_v40 = vand.u32 127, %v522_v39  ;;  %s2592_s28 = smov 32   ;;  %p1907_p6 = scmp.ne.s32.totalorder %s2661_s14, 1 }
 0x164   : > { %2026 = vmatprep.subr.msk.mxu0 %vm682_vm3, %v632_v23  ;;  %v630_v26 = vld [vmem:[%s3037_s4] sm:$0xff]  ;;  %v631_v27 = vld [vmem:[%s3037_s4 + $0x8] sm:$0xff]  ;;  %v517_v33 = vld [vmem:[%s2682_s26 + $0x58] sm:$0xff]  ;;  %s2598_s16 = smov (!%p1907_p6), 112  }
 0x165   : > { %2027 = vmatpush3.msk.msra.mxu0 %vm682_vm3, %v632_v23  ;;  %v2239_v28 = vpack.c.bf16 %v631_v27, %v630_v26  ;;  %v515_v31 = vld [vmem:[%s2682_s26 + $0x48] sm:$0xff]  ;;  %v514_v32 = vld [vmem:[%s2682_s26 + $0x40] sm:$0xff]  ;;  %v516_v34 = vld [vmem:[%s2682_s26 + $0x50] sm:$0xff]  ;;  %v2588_v26 = vmov 0.0|0.0  }
 0x166   : > { %v519_v35 = vld [vmem:[%s2682_s26 + $0x68] sm:$0xff]  ;;  %v518_v36 = vld [vmem:[%s2682_s26 + $0x60] sm:$0xff]  ;;  %v521_v37 = vld [vmem:[%s2682_s26 + $0x78] sm:$0xff]  ;;  %2243 = vmatprep.subr.bf16.mxu1 %v2588_v26 }
 0x167   : > { %534 = vperm.xlu1 %2414, %v509_v21   ;;  %528 = vperm.xlu0 %2413, %v507_v22   ;;  %v520_v38 = vld [vmem:[%s2682_s26 + $0x70] sm:$0xff]  ;;  %v490_v9 = vld [vmem:[%s2677_s23] sm:$0xff]  ;;  %v491_v11 = vld [vmem:[%s2677_s23 + $0x8] sm:$0xff] }
 0x168   : > { %2240 = vmatprep.subr.bf16.mxu0 %v2239_v28  ;;  %v492_v12 = vld [vmem:[%s2677_s23 + $0x10] sm:$0xff]  ;;  %v493_v13 = vld [vmem:[%s2677_s23 + $0x18] sm:$0xff]  ;;  %v494_v14 = vld [vmem:[%s2677_s23 + $0x20] sm:$0xff] }
 0x169   : > { %v495_v15 = vld [vmem:[%s2677_s23 + $0x28] sm:$0xff]  ;;  %v496_v16 = vld [vmem:[%s2677_s23 + $0x30] sm:$0xff]  ;;  %v497_v17 = vld [vmem:[%s2677_s23 + $0x38] sm:$0xff] }
 0x16a   : > { %v498_v18 = vld [vmem:[%s2677_s23 + $0x40] sm:$0xff]  ;;  %v499_v19 = vld [vmem:[%s2677_s23 + $0x48] sm:$0xff]  ;;  %v500_v20 = vld [vmem:[%s2677_s23 + $0x50] sm:$0xff] }
 0x16b   : > { %540 = vperm.xlu1 %2414, %v511_v24   ;;  %537 = vperm.xlu0 %2413, %v510_v25   ;;  %v501_v21 = vld [vmem:[%s2677_s23 + $0x58] sm:$0xff]  ;;  %v502_v22 = vld [vmem:[%s2677_s23 + $0x60] sm:$0xff]  ;;  %v503_v23 = vld [vmem:[%s2677_s23 + $0x68] sm:$0xff] }
 0x16c   : > { %v504_v24 = vld [vmem:[%s2677_s23 + $0x70] sm:$0xff]  ;;  %v505_v25 = vld [vmem:[%s2677_s23 + $0x78] sm:$0xff]  ;;  %v2815_v27 = vld [vmem:[%s3038_s5] ss:$0 sm:$0xff]  ;;  %s2590_s23 = smov 96  }
 0x16f   : > { %546 = vperm.xlu1 %2414, %v513_v29   ;;  %543 = vperm.xlu0 %2413, %v512_v30  }
 0x173   : > { %552 = vperm.xlu1 %2414, %v515_v31   ;;  %549 = vperm.xlu0 %2413, %v514_v32  }
 0x177   : > { %558 = vperm.xlu1 %2414, %v517_v33   ;;  %555 = vperm.xlu0 %2413, %v516_v34  }
 0x17b   : > { %564 = vperm.xlu1 %2414, %v519_v35   ;;  %561 = vperm.xlu0 %2413, %v518_v36  }
 0x17f   : > { %570 = vperm.xlu1 %2414, %v521_v37   ;;  %567 = vperm.xlu0 %2413, %v520_v38  }
 0x1e2   : > { %v532_v41 = vpop.permute.xlu1 %531  ;;  %v526_v42 = vpop.permute.xlu0 %525 }
 0x1e3   : > { %vm572_vm5 = vcmp.eq.s32.totalorder %v526_v42, %v2724_v40  ;;  %vm574_vm6 = vcmp.eq.s32.totalorder %v532_v41, %v2724_v40 }
 0x1e4   : > { %v1821_v44 = vsel %vm572_vm5, 1.0, %v2587_v43  ;;  %v1823_v47 = vsel %vm574_vm6, 1.0, %v2587_v43 }
 0x1e5   : > { %2028 = vmatprep.mubr.msk.f32.mxu0 %vm633_vm4, %v1821_v44 }
 0x1e6   : > { %v535_v45 = vpop.permute.xlu1 %534  ;;  %v529_v46 = vpop.permute.xlu0 %528 }
 0x1e7   : > { %vm573_vm7 = vcmp.eq.s32.totalorder %v529_v46, %v2724_v40  ;;  %vm575_vm8 = vcmp.eq.s32.totalorder %v535_v45, %v2724_v40 }
 0x1e8   : > { %v1822_v48 = vsel %vm573_vm7, 1.0, %v2587_v43  ;;  %v1824_v51 = vsel %vm575_vm8, 1.0, %v2587_v43  ;;  %vm831_vm7 = vcmask 130048   ;;  %vm1081_vm8 = vcmask 261120  }
 0x1e9   : > { %2029 = vmatmul.mubr.msk.f32.vlgmr.msra.gmra.mrb[0].mxu0 %vm633_vm4, %v1822_v48 }
 0x1ea   : > { %2242 = vmatpush3.bf16.msra.mxu0 %v2239_v28  ;;  %v541_v49 = vpop.permute.xlu1 %540  ;;  %2031 = vmatprep.mubr.msk.f32.mxu0 %vm633_vm4, %v1823_v47  ;;  %v538_v50 = vpop.permute.xlu0 %537 }
 0x1eb   : > { %vm576_vm9 = vcmp.eq.s32.totalorder %v538_v50, %v2724_v40  ;;  %vm577_vm10 = vcmp.eq.s32.totalorder %v541_v49, %v2724_v40  ;;  %2275 = vmatprep.subr.bf16.mxu0 %v2588_v26 }
 0x1ec   : > { %v1825_v52 = vsel %vm576_vm9, 1.0, %v2587_v43  ;;  %v1826_v55 = vsel %vm577_vm10, 1.0, %v2587_v43  ;;  %vm2823_vm9 = vmpackc.low %vm1081_vm8, %vm1081_vm8 }
 0x1ed   : > { %2032 = vmatmul.mubr.msk.f32.gmra.mrb[2].mxu0 %vm633_vm4, %v1824_v51 }
 0x1ee   : > { %v547_v53 = vpop.permute.xlu1 %546  ;;  %2034 = vmatprep.mubr.msk.f32.mxu0 %vm633_vm4, %v1825_v52  ;;  %v544_v54 = vpop.permute.xlu0 %543 }
 0x1ef   : > { %vm578_vm11 = vcmp.eq.s32.totalorder %v544_v54, %v2724_v40  ;;  %vm579_vm12 = vcmp.eq.s32.totalorder %v547_v53, %v2724_v40 }
 0x1f0   : > { %v1827_v56 = vsel %vm578_vm11, 1.0, %v2587_v43  ;;  %v1828_v59 = vsel %vm579_vm12, 1.0, %v2587_v43  ;;  %vm2594_vm11 = vmmov (!%p1907_p6), 0   ;;  %vm1648_vm12 = vcmask (!%p1907_p6), 523264  }
 0x1f1   : > { %2035 = vmatmul.mubr.msk.f32.gmra.mrb[4].mxu0 %vm633_vm4, %v1826_v55 }
 0x1f2   : > { %v553_v57 = vpop.permute.xlu1 %552  ;;  %2037 = vmatprep.mubr.msk.f32.mxu0 %vm633_vm4, %v1827_v56  ;;  %v550_v58 = vpop.permute.xlu0 %549 }
 0x1f3   : > { %vm580_vm13 = vcmp.eq.s32.totalorder %v550_v58, %v2724_v40  ;;  %vm581_vm14 = vcmp.eq.s32.totalorder %v553_v57, %v2724_v40 }
 0x1f4   : > { %v1829_v60 = vsel %vm580_vm13, 1.0, %v2587_v43  ;;  %v1830_v63 = vsel %vm581_vm14, 1.0, %v2587_v43  ;;  %vm1742_vm13 = vcmask (!%p1907_p6), 125952  }
 0x1f5   : > { %2038 = vmatmul.mubr.msk.f32.gmra.mrb[6].mxu0 %vm633_vm4, %v1828_v59 }
 0x1f6   : > { %v559_v61 = vpop.permute.xlu1 %558  ;;  %2040 = vmatprep.mubr.msk.f32.mxu0 %vm633_vm4, %v1829_v60  ;;  %v556_v62 = vpop.permute.xlu0 %555 }
 0x1f7   : > { %vm582_vm15 = vcmp.eq.s32.totalorder %v556_v62, %v2724_v40  ;;  %vm583_vm0 = vcmp.eq.s32.totalorder %v559_v61, %v2724_v40 }
 0x1f8   : > { %v1831_v0 = vsel %vm582_vm15, 1.0, %v2587_v43  ;;  %v1832_v3 = vsel %vm583_vm0, 1.0, %v2587_v43 }
 0x1f9   : > { %2041 = vmatmul.mubr.msk.f32.gmra.mrb[8].mxu0 %vm633_vm4, %v1830_v63 }
 0x1fa   : > { %v565_v1 = vpop.permute.xlu1 %564  ;;  %2043 = vmatprep.mubr.msk.f32.mxu0 %vm633_vm4, %v1831_v0  ;;  %v562_v2 = vpop.permute.xlu0 %561 }
 0x1fb   : > { %vm584_vm1 = vcmp.eq.s32.totalorder %v562_v2, %v2724_v40  ;;  %vm585_vm2 = vcmp.eq.s32.totalorder %v565_v1, %v2724_v40 }
 0x1fc   : > { %v1833_v4 = vsel %vm584_vm1, 1.0, %v2587_v43  ;;  %v1834_v7 = vsel %vm585_vm2, 1.0, %v2587_v43 }
 0x1fd   : > { %2044 = vmatmul.mubr.msk.f32.gmra.mrb[10].mxu0 %vm633_vm4, %v1832_v3 }
 0x1fe   : > { %v571_v5 = vpop.permute.xlu1 %570  ;;  %2046 = vmatprep.mubr.msk.f32.mxu0 %vm633_vm4, %v1833_v4  ;;  %v568_v6 = vpop.permute.xlu0 %567 }
 0x1ff   : > { %vm586_vm5 = vcmp.eq.s32.totalorder %v568_v6, %v2724_v40  ;;  %vm587_vm6 = vcmp.eq.s32.totalorder %v571_v5, %v2724_v40 }
 0x200   : > { %v1835_v8 = vsel %vm586_vm5, 1.0, %v2587_v43  ;;  %v1836_v10 = vsel %vm587_vm6, 1.0, %v2587_v43 }
 0x201   : > { %2047 = vmatmul.mubr.msk.f32.gmra.mrb[12].mxu0 %vm633_vm4, %v1834_v7 }
 0x202   : > { %2049 = vmatprep.mubr.msk.f32.mxu0 %vm633_vm4, %v1835_v8 }
 0x205   : > { %2050 = vmatmul.mubr.msk.f32.gmra.mrb[14].mxu0 %vm633_vm4, %v1836_v10  ;;  %vm2589_vm4 = vmmov 0  }
 0x206   : > { %2056 = vmatprep.mubr.msk.f32.mxu0 %vm831_vm7, %v490_v9  ;;  %2112 = vmatprep.mubr.msk.f32.mxu1 %vm2589_vm4, %v2587_v43 }
 0x209   : > { %2057 = vmatmul.mubr.msk.f32.vlgmr.msra.gmra.mrb[0].mxu0 %vm831_vm7, %v491_v11 }
 0x20a   : > { %2059 = vmatprep.mubr.msk.f32.mxu0 %vm831_vm7, %v492_v12 }
 0x20d   : > { %2060 = vmatmul.mubr.msk.f32.gmra.mrb[2].mxu0 %vm831_vm7, %v493_v13 }
 0x20e   : > { %2062 = vmatprep.mubr.msk.f32.mxu0 %vm831_vm7, %v494_v14 }
 0x211   : > { %2063 = vmatmul.mubr.msk.f32.gmra.mrb[4].mxu0 %vm831_vm7, %v495_v15 }
 0x212   : > { %2065 = vmatprep.mubr.msk.f32.mxu0 %vm831_vm7, %v496_v16 }
 0x215   : > { %2066 = vmatmul.mubr.msk.f32.gmra.mrb[6].mxu0 %vm831_vm7, %v497_v17 }
 0x216   : > { %2068 = vmatprep.mubr.msk.f32.mxu0 %vm831_vm7, %v498_v18 }
 0x219   : > { %2069 = vmatmul.mubr.msk.f32.gmra.mrb[8].mxu0 %vm831_vm7, %v499_v19 }
 0x21a   : > { %2071 = vmatprep.mubr.msk.f32.mxu0 %vm831_vm7, %v500_v20 }
 0x21d   : > { %2072 = vmatmul.mubr.msk.f32.gmra.mrb[10].mxu0 %vm831_vm7, %v501_v21 }
 0x21e   : > { %2074 = vmatprep.mubr.msk.f32.mxu0 %vm831_vm7, %v502_v22 }
 0x221   : > { %2075 = vmatmul.mubr.msk.f32.gmra.mrb[12].mxu0 %vm831_vm7, %v503_v23 }
 0x222   : > { %2077 = vmatprep.mubr.msk.f32.mxu0 %vm831_vm7, %v504_v24 }
 0x225   : > { %2078 = vmatmul.mubr.msk.f32.gmra.mrb[14].mxu0 %vm831_vm7, %v505_v25 }
 0x226   : > { %2147 = vmatprep.mubr.msk.f32.mxu0 %vm2589_vm4, %v2587_v43 }
 0x2dc   : > { %v2058_v28 = vpop.f32.mrb[0].mxu0 }
 0x2dd   : > { %v1033_v29 = vadd.f32 %v2058_v28, %v2815_v27  ;;  %v946_v30 = vpop.f32.mrb[1].mxu0 }
 0x2de   : > { %v1032_v31 = vadd.f32 %v2815_v27, %v946_v30 }
 0x2df   : > { %v1049_v32 = vmul.f32 0.01, %v1033_v29 }
 0x2e0   : > { %v1048_v33 = vmul.f32 0.01, %v1032_v31  ;;  %v2061_v34 = vpop.f32.mrb[2].mxu0 }
 0x2e1   : > { %v1065_v35 = vmax.f32 %v1033_v29, %v1049_v32  ;;  %v1035_v36 = vadd.f32 %v2061_v34, %v2815_v27  ;;  %v956_v37 = vpop.f32.mrb[3].mxu0 }
 0x2e2   : > { %v1064_v38 = vmax.f32 %v1032_v31, %v1048_v33  ;;  %v1034_v40 = vadd.f32 %v2815_v27, %v956_v37 }
 0x2e3   : > { %v1051_v41 = vmul.f32 0.01, %v1035_v36 }
 0x2e4   : > { %v1050_v44 = vmul.f32 0.01, %v1034_v40  ;;  %v2064_v45 = vpop.f32.mrb[4].mxu0  ;;  %v2827_v46 = vpack.i.bf16 %v1065_v35, %v1064_v38  ;;  %v2244_v47 = vpack.c.bf16 %v1065_v35, %v1064_v38 }
 0x2e5   : > { %v1067_v48 = vmax.f32 %v1035_v36, %v1051_v41  ;;  %v1037_v49 = vadd.f32 %v2064_v45, %v2815_v27  ;;  %v966_v50 = vpop.f32.mrb[5].mxu0 }
 0x2e6   : > { %v1066_v51 = vmax.f32 %v1034_v40, %v1050_v44  ;;  %v1036_v52 = vadd.f32 %v2815_v27, %v966_v50  ;;  %2416 = vrot.lane.b32.xlu0 %v2827_v46, %s2590_s23  ;;  %2246 = vmatpush3.bf16.xpose.msk.msra.mxu1 %vm2823_vm9, %v2244_v47 }
 0x2e7   : > { %v1053_v53 = vmul.f32 0.01, %v1037_v49  ;;  %2247 = vmatprep.subr.bf16.mxu1 %v2588_v26 }
 0x2e8   : > { %v1052_v54 = vmul.f32 0.01, %v1036_v52  ;;  %v2067_v55 = vpop.f32.mrb[6].mxu0  ;;  %v2836_v56 = vpack.i.bf16 %v1067_v48, %v1066_v51  ;;  %v2248_v57 = vpack.c.bf16 %v1067_v48, %v1066_v51  ;;  %v1080_v51 = vld [vmem:[#allocation4] sm:$0xf] }
 0x2e9   : > { %v1069_v58 = vmax.f32 %v1037_v49, %v1053_v53  ;;  %v1039_v59 = vadd.f32 %v2067_v55, %v2815_v27  ;;  %v976_v60 = vpop.f32.mrb[7].mxu0 }
 0x2ea   : > { %v1068_v61 = vmax.f32 %v1036_v52, %v1052_v54  ;;  %v1038_v62 = vadd.f32 %v2815_v27, %v976_v60  ;;  %2421 = vrot.lane.b32.xlu1 %v2836_v56, %s2590_s23 }
 0x2eb   : > { %v1055_v63 = vmul.f32 0.01, %v1039_v59 }
 0x2ec   : > { %v1054_v0 = vmul.f32 0.01, %v1038_v62  ;;  %v2070_v1 = vpop.f32.mrb[8].mxu0  ;;  %v2842_v2 = vpack.i.bf16 %v1069_v58, %v1068_v61  ;;  %v2252_v3 = vpack.c.bf16 %v1069_v58, %v1068_v61 }
 0x2ed   : > { %v1071_v4 = vmax.f32 %v1039_v59, %v1055_v63  ;;  %v1041_v5 = vadd.f32 %v2070_v1, %v2815_v27  ;;  %v986_v6 = vpop.f32.mrb[9].mxu0 }
 0x2ee   : > { %v1070_v7 = vmax.f32 %v1038_v62, %v1054_v0  ;;  %v1040_v8 = vadd.f32 %v2815_v27, %v986_v6  ;;  %2250 = vmatpush3.bf16.xpose.msk.msra.mxu1 %vm2823_vm9, %v2248_v57  ;;  %2426 = vrot.lane.b32.xlu0 %v2842_v2, %s2590_s23 }
 0x2ef   : > { %v1057_v9 = vmul.f32 0.01, %v1041_v5  ;;  %2251 = vmatprep.subr.bf16.mxu1 %v2588_v26 }
 0x2f0   : > { %v1056_v10 = vmul.f32 0.01, %v1040_v8  ;;  %v2073_v11 = vpop.f32.mrb[10].mxu0  ;;  %v2851_v12 = vpack.i.bf16 %v1071_v4, %v1070_v7  ;;  %v2256_v13 = vpack.c.bf16 %v1071_v4, %v1070_v7 }
 0x2f1   : > { %v1073_v14 = vmax.f32 %v1041_v5, %v1057_v9  ;;  %v1043_v15 = vadd.f32 %v2073_v11, %v2815_v27  ;;  %v996_v16 = vpop.f32.mrb[11].mxu0 }
 0x2f2   : > { %v1072_v17 = vmax.f32 %v1040_v8, %v1056_v10  ;;  %v1042_v18 = vadd.f32 %v2815_v27, %v996_v16  ;;  %2431 = vrot.lane.b32.xlu1 %v2851_v12, %s2590_s23 }
 0x2f3   : > { %v1059_v19 = vmul.f32 0.01, %v1043_v15 }
 0x2f4   : > { %v1058_v20 = vmul.f32 0.01, %v1042_v18  ;;  %v2076_v21 = vpop.f32.mrb[12].mxu0  ;;  %v2435_v22 = vpack.i.bf16 %v1073_v14, %v1072_v17  ;;  %v2260_v23 = vpack.c.bf16 %v1073_v14, %v1072_v17 }
 0x2f5   : > { %v1075_v24 = vmax.f32 %v1043_v15, %v1059_v19  ;;  %v1045_v25 = vadd.f32 %v2076_v21, %v2815_v27  ;;  %v1006_v28 = vpop.f32.mrb[13].mxu0 }
 0x2f6   : > { %v1074_v29 = vmax.f32 %v1042_v18, %v1058_v20  ;;  %v1044_v30 = vadd.f32 %v2815_v27, %v1006_v28  ;;  %2254 = vmatpush3.bf16.xpose.msk.msra.mxu1 %vm2823_vm9, %v2252_v3  ;;  %2436 = vrot.lane.b32.xlu0 %v2435_v22, %s2590_s23 }
 0x2f7   : > { %v1061_v31 = vmul.f32 0.01, %v1045_v25  ;;  %2255 = vmatprep.subr.bf16.mxu1 %v2588_v26 }
 0x2f8   : > { %v1060_v32 = vmul.f32 0.01, %v1044_v30  ;;  %v2079_v33 = vpop.f32.mrb[14].mxu0  ;;  %v2440_v34 = vpack.i.bf16 %v1075_v24, %v1074_v29  ;;  %v2264_v35 = vpack.c.bf16 %v1075_v24, %v1074_v29 }
 0x2f9   : > { %v1077_v36 = vmax.f32 %v1045_v25, %v1061_v31  ;;  %v1047_v37 = vadd.f32 %v2079_v33, %v2815_v27  ;;  %v1016_v38 = vpop.f32.mrb[15].mxu0 }
 0x2fa   : > { %v1076_v40 = vmax.f32 %v1044_v30, %v1060_v32  ;;  %v1046_v41 = vadd.f32 %v2815_v27, %v1016_v38  ;;  %2441 = vrot.lane.b32.xlu1 %v2440_v34, %s2590_s23 }
 0x2fb   : > { %v1063_v44 = vmul.f32 0.01, %v1047_v37 }
 0x2fc   : > { %v1062_v45 = vmul.f32 0.01, %v1046_v41  ;;  %v2445_v47 = vpack.i.bf16 %v1077_v36, %v1076_v40  ;;  %v2268_v48 = vpack.c.bf16 %v1077_v36, %v1076_v40 }
 0x2fd   : > { %v1079_v49 = vmax.f32 %v1047_v37, %v1063_v44 }
 0x2fe   : > { %v1078_v50 = vmax.f32 %v1046_v41, %v1062_v45  ;;  %2258 = vmatpush3.bf16.xpose.msk.msra.mxu1 %vm2823_vm9, %v2256_v13  ;;  %2446 = vrot.lane.b32.xlu0 %v2445_v47, %s2590_s23 }
 0x2ff   : > { %2259 = vmatprep.subr.bf16.mxu1 %v2588_v26 }
 0x300   : > { %v2450_v52 = vpack.i.bf16 %v1079_v49, %v1078_v50  ;;  %v2272_v53 = vpack.c.bf16 %v1079_v49, %v1078_v50 }
 0x302   : > { %1342 = vrot.lane.b32.xlu0 %v1080_v51, %s2590_s23  ;;  %2451 = vrot.lane.b32.xlu1 %v2450_v52, %s2590_s23 }
 0x306   : > { %2262 = vmatpush3.bf16.xpose.msk.msra.mxu1 %vm2823_vm9, %v2260_v23  ;;  %2461 = vrot.lane.b32.xlu0 %v2836_v56, %s2591_s27 }
 0x307   : > { %2456 = vrot.lane.b32.xlu1 %v2827_v46, %s2591_s27  ;;  %2263 = vmatprep.subr.bf16.mxu1 %v2588_v26 }
 0x30a   : > { %2471 = vrot.lane.b32.xlu0 %v2851_v12, %s2591_s27 }
 0x30b   : > { %2466 = vrot.lane.b32.xlu1 %v2842_v2, %s2591_s27 }
 0x30e   : > { %2266 = vmatpush3.bf16.xpose.msk.msra.mxu1 %vm2823_vm9, %v2264_v35  ;;  %2481 = vrot.lane.b32.xlu0 %v2440_v34, %s2591_s27 }
 0x30f   : > { %2476 = vrot.lane.b32.xlu1 %v2435_v22, %s2591_s27  ;;  %2267 = vmatprep.subr.bf16.mxu1 %v2588_v26 }
 0x312   : > { %2491 = vrot.lane.b32.xlu0 %v2450_v52, %s2591_s27 }
 0x313   : > { %2486 = vrot.lane.b32.xlu1 %v2445_v47, %s2591_s27 }
 0x316   : > { %2270 = vmatpush3.bf16.xpose.msk.msra.mxu1 %vm2823_vm9, %v2268_v48  ;;  %2501 = vrot.lane.b32.xlu0 %v2836_v56, %s2592_s28 }
 0x317   : > { %2496 = vrot.lane.b32.xlu1 %v2827_v46, %s2592_s28  ;;  %2271 = vmatprep.subr.bf16.mxu1 %v2588_v26 }
 0x31a   : > { %2511 = vrot.lane.b32.xlu0 %v2851_v12, %s2592_s28 }
 0x31b   : > { %2506 = vrot.lane.b32.xlu1 %v2842_v2, %s2592_s28 }
 0x31e   : > { %2521 = vrot.lane.b32.xlu0 %v2440_v34, %s2592_s28  ;;  %2274 = vmatpush3.bf16.xpose.msk.msra.mxu1 %vm2823_vm9, %v2272_v53 }
 0x31f   : > { %2516 = vrot.lane.b32.xlu1 %v2435_v22, %s2592_s28  ;;  %2299 = vmatprep.subr.bf16.mxu1 %v2588_v26 }
 0x322   : > { %2531 = vrot.lane.b32.xlu0 %v2450_v52, %s2592_s28 }
 0x323   : > { %2526 = vrot.lane.b32.xlu1 %v2445_v47, %s2592_s28 }
 0x325   : > { %2113 = vmatmul.mubr.msk.f32.vlgmr.msra.gmra.mrb[0].mxu1 %vm1081_vm8, %v1080_v51 }
 0x326   : > { %2182 = vmatprep.mubr.msk.f32.mxu1 %vm2589_vm4, %v2587_v43 }
 0x358   : > { %v2417_v27 = vpop.permute.xlu0 %2416 }
 0x359   : > { %v2419_v46 = vunpack.i.h.bf16 %v2417_v27  ;;  %v2418_v54 = vunpack.i.l.bf16 %v2417_v27 }
 0x35b   : > { %v2300_v55 = vpack.c.bf16 %v2419_v46, %v2418_v54 }
 0x35c   : > { %v2422_v56 = vpop.permute.xlu1 %2421 }
 0x35d   : > { %2302 = vmatpush3.bf16.xpose.msk.msra.mxu1 %vm2823_vm9, %v2300_v55  ;;  %v2424_v57 = vunpack.i.h.bf16 %v2422_v56  ;;  %v2423_v58 = vunpack.i.l.bf16 %v2422_v56 }
 0x35e   : > { %2303 = vmatprep.subr.bf16.mxu1 %v2588_v26 }
 0x35f   : > { %v2304_v59 = vpack.c.bf16 %v2424_v57, %v2423_v58  ;;  %v2939_v57 = vshrl.u32 %v522_v39, 7  ;;  %v2946_v58 = vld [vmem:[%s383_s19] ss:$0 sm:$0xff] }
 0x360   : > { %v2427_v60 = vpop.permute.xlu0 %2426 }
 0x361   : > { %v2429_v61 = vunpack.i.h.bf16 %v2427_v60  ;;  %v2428_v62 = vunpack.i.l.bf16 %v2427_v60  ;;  %vm627_vm10 = vcmp.eq.s32.totalorder %v2939_v57, %v2946_v58 }
 0x363   : > { %v2308_v63 = vpack.c.bf16 %v2429_v61, %v2428_v62 }
 0x364   : > { %v2432_v0 = vpop.permute.xlu1 %2431 }
 0x365   : > { %2306 = vmatpush3.bf16.xpose.msk.msra.mxu1 %vm2823_vm9, %v2304_v59  ;;  %v2434_v2 = vunpack.i.h.bf16 %v2432_v0  ;;  %v2433_v3 = vunpack.i.l.bf16 %v2432_v0 }
 0x366   : > { %2307 = vmatprep.subr.bf16.mxu1 %v2588_v26 }
 0x367   : > { %v2312_v6 = vpack.c.bf16 %v2434_v2, %v2433_v3 }
 0x368   : > { %v2437_v1 = vpop.permute.xlu0 %2436 }
 0x369   : > { %v2439_v9 = vunpack.i.h.bf16 %v2437_v1  ;;  %v2438_v10 = vunpack.i.l.bf16 %v2437_v1 }
 0x36b   : > { %v2316_v15 = vpack.c.bf16 %v2439_v9, %v2438_v10 }
 0x36c   : > { %v2442_v4 = vpop.permute.xlu1 %2441 }
 0x36d   : > { %2310 = vmatpush3.bf16.xpose.msk.msra.mxu1 %vm2823_vm9, %v2308_v63  ;;  %v2444_v20 = vunpack.i.h.bf16 %v2442_v4  ;;  %v2443_v21 = vunpack.i.l.bf16 %v2442_v4 }
 0x36e   : > { %2311 = vmatprep.subr.bf16.mxu1 %v2588_v26 }
 0x36f   : > { %v2320_v28 = vpack.c.bf16 %v2444_v20, %v2443_v21 }
 0x370   : > { %v2447_v5 = vpop.permute.xlu0 %2446 }
 0x371   : > { %v2449_v33 = vunpack.i.h.bf16 %v2447_v5  ;;  %v2448_v34 = vunpack.i.l.bf16 %v2447_v5 }
 0x373   : > { %v2324_v40 = vpack.c.bf16 %v2449_v33, %v2448_v34 }
 0x374   : > { %v2912_v7 = vpop.permute.xlu0 %1342  ;;  %v2452_v8 = vpop.permute.xlu1 %2451 }
 0x375   : > { %2314 = vmatpush3.bf16.xpose.msk.msra.mxu1 %vm2823_vm9, %v2312_v6  ;;  %v2454_v48 = vunpack.i.h.bf16 %v2452_v8  ;;  %v2453_v49 = vunpack.i.l.bf16 %v2452_v8 }
 0x376   : > { %2315 = vmatprep.subr.bf16.mxu1 %v2588_v26 }
 0x377   : > { %v2328_v27 = vpack.c.bf16 %v2454_v48, %v2453_v49 }
 0x378   : > { %v2462_v11 = vpop.permute.xlu0 %2461 }
 0x379   : > { %v2457_v12 = vpop.permute.xlu1 %2456  ;;  %v2464_v16 = vunpack.i.h.bf16 %v2462_v11  ;;  %v2463_v17 = vunpack.i.l.bf16 %v2462_v11 }
 0x37a   : > { %v2459_v13 = vunpack.i.h.bf16 %v2457_v12  ;;  %v2458_v14 = vunpack.i.l.bf16 %v2457_v12 }
 0x37b   : > { %v2279_v22 = vpack.c.bf16 %v2464_v16, %v2463_v17  ;;  %v2959_v17 = vsel %vm627_vm10, 1.0, %v2587_v43 }
 0x37c   : > { %v2276_v18 = vpack.c.bf16 %v2459_v13, %v2458_v14  ;;  %v2472_v25 = vpop.permute.xlu0 %2471 }
 0x37d   : > { %v2467_v19 = vpop.permute.xlu1 %2466  ;;  %2318 = vmatpush3.bf16.xpose.msk.msra.mxu1 %vm2823_vm9, %v2316_v15  ;;  %v2474_v29 = vunpack.i.h.bf16 %v2472_v25  ;;  %v2473_v30 = vunpack.i.l.bf16 %v2472_v25 }
 0x37e   : > { %2277 = vmatpush3.bf16.msra.mxu0 %v2276_v18  ;;  %2319 = vmatprep.subr.bf16.mxu1 %v2588_v26  ;;  %v2469_v23 = vunpack.i.h.bf16 %v2467_v19  ;;  %v2468_v24 = vunpack.i.l.bf16 %v2467_v19 }
 0x37f   : > { %2278 = vmatprep.subr.bf16.mxu0 %v2588_v26  ;;  %v2285_v35 = vpack.c.bf16 %v2474_v29, %v2473_v30 }
 0x380   : > { %v2282_v31 = vpack.c.bf16 %v2469_v23, %v2468_v24  ;;  %v2482_v38 = vpop.permute.xlu0 %2481 }
 0x381   : > { %v2477_v32 = vpop.permute.xlu1 %2476  ;;  %v2484_v41 = vunpack.i.h.bf16 %v2482_v38  ;;  %v2483_v44 = vunpack.i.l.bf16 %v2482_v38 }
 0x382   : > { %2280 = vmatpush3.bf16.msra.mxu0 %v2279_v22  ;;  %v2479_v36 = vunpack.i.h.bf16 %v2477_v32  ;;  %v2478_v37 = vunpack.i.l.bf16 %v2477_v32 }
 0x383   : > { %2281 = vmatprep.subr.bf16.mxu0 %v2588_v26  ;;  %v2291_v50 = vpack.c.bf16 %v2484_v41, %v2483_v44 }
 0x384   : > { %v2288_v45 = vpack.c.bf16 %v2479_v36, %v2478_v37  ;;  %v2492_v53 = vpop.permute.xlu0 %2491 }
 0x385   : > { %2322 = vmatpush3.bf16.xpose.msk.msra.mxu1 %vm2823_vm9, %v2320_v28  ;;  %v2487_v47 = vpop.permute.xlu1 %2486  ;;  %v2494_v46 = vunpack.i.h.bf16 %v2492_v53  ;;  %v2493_v54 = vunpack.i.l.bf16 %v2492_v53 }
 0x386   : > { %2283 = vmatpush3.bf16.msra.mxu0 %v2282_v31  ;;  %2323 = vmatprep.subr.bf16.mxu1 %v2588_v26  ;;  %v2489_v51 = vunpack.i.h.bf16 %v2487_v47  ;;  %v2488_v52 = vunpack.i.l.bf16 %v2487_v47 }
 0x387   : > { %2284 = vmatprep.subr.bf16.mxu0 %v2588_v26  ;;  %v2297_v56 = vpack.c.bf16 %v2494_v46, %v2493_v54 }
 0x388   : > { %v2294_v55 = vpack.c.bf16 %v2489_v51, %v2488_v52  ;;  %v2502_v18 = vpop.permute.xlu0 %2501 }
 0x389   : > { %v2497_v13 = vpop.permute.xlu1 %2496  ;;  %v2504_v21 = vunpack.i.h.bf16 %v2502_v18  ;;  %v2503_v22 = vunpack.i.l.bf16 %v2502_v18  ;;  %v1635_v18 = vld [vmem:[%s3041_s8 + $0x10] sm:$0xff] (!%p1907_p6) }
 0x38a   : > { %2286 = vmatpush3.bf16.msra.mxu0 %v2285_v35  ;;  %v2499_v15 = vunpack.i.h.bf16 %v2497_v13  ;;  %v2498_v16 = vunpack.i.l.bf16 %v2497_v13 }
 0x38b   : > { %2287 = vmatprep.subr.bf16.mxu0 %v2588_v26  ;;  %v2335_v25 = vpack.c.bf16 %v2504_v21, %v2503_v22  ;;  %v1636_v21 = vld [vmem:[%s3041_s8 + $0x18] sm:$0xff] (!%p1907_p6)  ;;  %v2595_v22 = vmov (!%p1907_p6), 0.0  }
 0x38c   : > { %v2332_v23 = vpack.c.bf16 %v2499_v15, %v2498_v16  ;;  %v2512_v30 = vpop.permute.xlu0 %2511  ;;  %v1633_v16 = vld [vmem:[%s3041_s8] sm:$0xff] (!%p1907_p6) }
 0x38d   : > { %2326 = vmatpush3.bf16.xpose.msk.msra.mxu1 %vm2823_vm9, %v2324_v40  ;;  %v2507_v24 = vpop.permute.xlu1 %2506  ;;  %v2514_v31 = vunpack.i.h.bf16 %v2512_v30  ;;  %v2513_v32 = vunpack.i.l.bf16 %v2512_v30 }
 0x38e   : > { %2289 = vmatpush3.bf16.msra.mxu0 %v2288_v45  ;;  %2327 = vmatprep.subr.bf16.mxu1 %v2588_v26  ;;  %v2509_v28 = vunpack.i.h.bf16 %v2507_v24  ;;  %v2508_v29 = vunpack.i.l.bf16 %v2507_v24  ;;  %v2359_v24 = vpack.c.bf16 (!%p1907_p6), %v1636_v21, %v1635_v18 }
 0x38f   : > { %2290 = vmatprep.subr.bf16.mxu0 %v2588_v26  ;;  %v2341_v35 = vpack.c.bf16 %v2514_v31, %v2513_v32  ;;  %v1639_v31 = vld [vmem:[%s3041_s8 + $0x30] sm:$0xff] (!%p1907_p6)  ;;  %v1640_v32 = vld [vmem:[%s3041_s8 + $0x38] sm:$0xff] (!%p1907_p6) }
 0x390   : > { %v2338_v33 = vpack.c.bf16 %v2509_v28, %v2508_v29  ;;  %v1637_v28 = vld [vmem:[%s3041_s8 + $0x20] sm:$0xff] (!%p1907_p6)  ;;  %v1638_v29 = vld [vmem:[%s3041_s8 + $0x28] sm:$0xff] (!%p1907_p6) }
 0x391   : > { %v2517_v34 = vpop.permute.xlu1 %2516  ;;  %v2362_v30 = vpack.c.bf16 (!%p1907_p6), %v1638_v29, %v1637_v28 }
 0x392   : > { %2292 = vmatpush3.bf16.msra.mxu0 %v2291_v50  ;;  %v2519_v36 = vunpack.i.h.bf16 %v2517_v34  ;;  %v2518_v37 = vunpack.i.l.bf16 %v2517_v34  ;;  %v2365_v34 = vpack.c.bf16 (!%p1907_p6), %v1640_v32, %v1639_v31 }
 0x393   : > { %2293 = vmatprep.subr.bf16.mxu0 %v2588_v26 }
 0x394   : > { %v2344_v41 = vpack.c.bf16 %v2519_v36, %v2518_v37  ;;  %v1908_v36 = vld [vmem:[%s3042_s9] ss:$0 sm:$0xff] (!%p1907_p6) }
 0x395   : > { %2330 = vmatpush3.bf16.xpose.msk.msra.mxu1 %vm2823_vm9, %v2328_v27  ;;  %v2527_v44 = vpop.permute.xlu1 %2526 }
 0x396   : > { %2295 = vmatpush3.bf16.msra.mxu0 %v2294_v55  ;;  %v2529_v47 = vunpack.i.h.bf16 %v2527_v44  ;;  %v2528_v48 = vunpack.i.l.bf16 %v2527_v44 }
 0x397   : > { %2296 = vmatprep.subr.bf16.mxu0 %v2588_v26 }
 0x398   : > { %v2350_v52 = vpack.c.bf16 %v2529_v47, %v2528_v48 }
 0x39a   : > { %2298 = vmatpush3.bf16.msra.mxu0 %v2297_v56 }
 0x39b   : > { %2331 = vmatprep.subr.bf16.mxu0 %v2588_v26 }
 0x39c   : > { %2183 = vmatmul.mubr.msk.f32.vlgmr.msra.gmra.mrb[2].mxu1 %vm1081_vm8, %v2912_v7 }
 0x3f8   : > { %v1199_v42 = vpop.f32.mrb[0].mxu1 }
 0x3f9   : > { %v1203_v59 = vsel %vm627_vm10, %v1199_v42, -1e+30  ;;  %v2114_v60 = vpop.f32.mrb[1].mxu1 }
 0x3fa   : > { %v1204_v61 = vsel %vm682_vm3, %v1203_v59, -inf }
 0x3fb   : > { %v1205_v62 = vrot.slane %v1204_v61, 4 }
 0x3fd   : > { %v1206_v39 = vmax.f32 %v1204_v61, %v1205_v62 }
 0x3ff   : > { %v1207_v63 = vrot.slane %v1206_v39, 2 }
 0x401   : > { %v1208_v0 = vmax.f32 %v1206_v39, %v1207_v63 }
 0x403   : > { %v1209_v1 = vrot.slane %v1208_v0, 1 }
 0x405   : > { %v1210_v2 = vmax.f32 %v1208_v0, %v1209_v1 }
 0x407   : > { %v1211_v3 = vsub.f32 %v1203_v59, %v1210_v2 }
 0x409   : > { %v1212_v4 = vmul.f32 1.442695, %v1211_v3 }
 0x40b   : > { %2535 = vpow2.f32 %v1212_v4 }
 0x415   : > { %v2536_v5 = vpop.eup %2535 }
 0x416   : > { %v1214_v6 = vsel %vm682_vm3, %v2536_v5, 0.0 }
 0x417   : > { %v1215_v7 = vrot.slane %v1214_v6, 4 }
 0x419   : > { %v1216_v8 = vadd.f32 %v1215_v7, %v1214_v6 }
 0x41b   : > { %v1217_v9 = vrot.slane %v1216_v8, 2 }
 0x41d   : > { %v1218_v10 = vadd.f32 %v1217_v9, %v1216_v8 }
 0x41f   : > { %v1219_v11 = vrot.slane %v1218_v10, 1 }
 0x421   : > { %v1220_v12 = vadd.f32 %v1219_v11, %v1218_v10 }
 0x423   : > { %2537 = vrcp.f32 %v1220_v12  ;;  %v1619_v12 = vld [vmem:[#allocation2] sm:$0xf] }
 0x42d   : > { %v2538_v14 = vpop.eup %2537 }
 0x42e   : > { %v1222_v19 = vmul.f32 %v2538_v14, %v2536_v5 }
 0x430   : > { %v1223_v20 = vmul.f32 %v2959_v17, %v1222_v19  ;;  %v2593_v19 = vmov (!%p1907_p6), 0.0|0.0  }
 0x432   : > { %2148 = vmatmul.mubr.f32.vlgmr.msra.gmra.mrb[16].mxu0 %v1223_v20 }
 0x433   : > { %2333 = vmatpush3.bf16.msra.mxu0 %v2332_v23  ;;  %2217 = vmatprep.mubr.msk.f32.mxu0 %vm2589_vm4, %v2587_v43  ;;  %v2522_v43 = vpop.permute.xlu0 %2521  ;;  %v2596_v23 = vmov (!%p1907_p6), 1  }
 0x434   : > { %2334 = vmatprep.subr.bf16.mxu0 %v2588_v26  ;;  %v2524_v38 = vunpack.i.h.bf16 %v2522_v43  ;;  %v2523_v40 = vunpack.i.l.bf16 %v2522_v43  ;;  %2543 = vset.pattern.permute.xlu0 (!%p1907_p6), %v2596_v23 }
 0x436   : > { %v2347_v45 = vpack.c.bf16 %v2524_v38, %v2523_v40 }
 0x437   : > { %2336 = vmatpush3.bf16.msra.mxu0 %v2335_v25  ;;  %v2532_v49 = vpop.permute.xlu0 %2531  ;;  %v1724_v25 = vld [vmem:[#allocation5] sm:$0xf] (!%p1907_p6) }
 0x438   : > { %2337 = vmatprep.subr.bf16.mxu0 %v2588_v26  ;;  %v2534_v50 = vunpack.i.h.bf16 %v2532_v49  ;;  %v2533_v51 = vunpack.i.l.bf16 %v2532_v49  ;;  %1733 = vperm.xlu0 (!%p1907_p6), %2543, %v1724_v25  }
 0x43a   : > { %v2353_v53 = vpack.c.bf16 %v2534_v50, %v2533_v51 }
 0x43b   : > { %2339 = vmatpush3.bf16.msra.mxu0 %v2338_v33  ;;  %v2597_v33 = vmov (!%p1907_p6), 0  }
 0x43c   : > { %2340 = vmatprep.subr.bf16.mxu0 %v2588_v26  ;;  %2544 = vset.pattern.permute.xlu0 (!%p1907_p6), %v2597_v33 }
 0x43d   : > { %1727 = vperm.xlu0 (!%p1907_p6), %2544, %v1724_v25  }
 0x43f   : > { %2342 = vmatpush3.bf16.msra.mxu0 %v2341_v35 }
 0x440   : > { %2343 = vmatprep.subr.bf16.mxu0 %v2588_v26 }
 0x441   : > { %2545 = vset.pattern.permute.xlu0 (!%p1907_p6), %v2596_v23 }
 0x443   : > { %2345 = vmatpush3.bf16.msra.mxu0 %v2344_v41 }
 0x444   : > { %2346 = vmatprep.subr.bf16.mxu0 %v2588_v26 }
 0x447   : > { %2348 = vmatpush3.bf16.msra.mxu0 %v2347_v45 }
 0x448   : > { %2349 = vmatprep.subr.bf16.mxu0 %v2588_v26 }
 0x44b   : > { %2351 = vmatpush3.bf16.msra.mxu0 %v2350_v52 }
 0x44c   : > { %2352 = vmatprep.subr.bf16.mxu0 %v2588_v26 }
 0x44f   : > { %2354 = vmatpush3.bf16.msra.mxu0 %v2353_v53 }
 0x450   : > { %2355 = vmatprep.subr.bf16.mxu0 (!%p1907_p6), %v2593_v19 }
 0x46f   : > { %v1476_v27 = vpop.f32.mrb[2].mxu1 }
 0x470   : > { %v1480_v46 = vsel %vm627_vm10, %v1476_v27, -1e+30  ;;  %v2184_v54 = vpop.f32.mrb[3].mxu1 }
 0x471   : > { %v1481_v55 = vsel %vm682_vm3, %v1480_v46, -inf }
 0x472   : > { %v1482_v56 = vrot.slane %v1481_v55, 4 }
 0x474   : > { %v1483_v42 = vmax.f32 %v1481_v55, %v1482_v56 }
 0x476   : > { %v1484_v59 = vrot.slane %v1483_v42, 2 }
 0x478   : > { %v1485_v60 = vmax.f32 %v1483_v42, %v1484_v59 }
 0x47a   : > { %v1486_v61 = vrot.slane %v1485_v60, 1 }
 0x47c   : > { %v1487_v62 = vmax.f32 %v1485_v60, %v1486_v61 }
 0x47e   : > { %v1488_v39 = vsub.f32 %v1480_v46, %v1487_v62 }
 0x480   : > { %v1489_v63 = vmul.f32 1.442695, %v1488_v39 }
 0x482   : > { %2539 = vpow2.f32 %v1489_v63 }
 0x48c   : > { %v2540_v26 = vpop.eup %2539 }
 0x48d   : > { %v1491_v0 = vsel %vm682_vm3, %v2540_v26, 0.0  ;;  %vm1626_vm3 = vcmask 519168  }
 0x48e   : > { %v1492_v1 = vrot.slane %v1491_v0, 4 }
 0x490   : > { %v1493_v2 = vadd.f32 %v1492_v1, %v1491_v0 }
 0x492   : > { %v1494_v3 = vrot.slane %v1493_v2, 2 }
 0x494   : > { %v1495_v57 = vadd.f32 %v1494_v3, %v1493_v2 }
 0x496   : > { %v1496_v58 = vrot.slane %v1495_v57, 1 }
 0x498   : > { %v1497_v4 = vadd.f32 %v1496_v58, %v1495_v57 }
 0x49a   : > { %2541 = vrcp.f32 %v1497_v4 }
 0x4a4   : > { %v2542_v5 = vpop.eup %2541 }
 0x4a5   : > { %v1499_v6 = vmul.f32 %v2542_v5, %v2540_v26 }
 0x4a7   : > { %v1500_v7 = vmul.f32 %v2959_v17, %v1499_v6  ;;  %v1634_v17 = vld [vmem:[%s3041_s8 + $0x8] sm:$0xff] (!%p1907_p6) }
 0x4a8   : > { %v2356_v20 = vpack.c.bf16 (!%p1907_p6), %v1634_v17, %v1633_v16 }
 0x4a9   : > { %2218 = vmatmul.mubr.f32.vlgmr.msra.gmra.mrb[18].mxu0 %v1500_v7 }
 0x4aa   : > { %2236 = vmatprep.mubr.msk.f32.mxu0 (!%p1907_p6), %vm2594_vm11, %v2595_v22  ;;  %2357 = vmatpush3.bf16.msra.mxu0 (!%p1907_p6), %v2356_v20 }
 0x4ab   : > { %2358 = vmatprep.subr.bf16.mxu0 (!%p1907_p6), %v2593_v19 }
 0x4ae   : > { %2360 = vmatpush3.bf16.msra.mxu0 (!%p1907_p6), %v2359_v24 }
 0x4af   : > { %2361 = vmatprep.subr.bf16.mxu0 (!%p1907_p6), %v2593_v19 }
 0x4b2   : > { %2363 = vmatpush3.bf16.msra.mxu0 (!%p1907_p6), %v2362_v30 }
 0x4b3   : > { %2364 = vmatprep.subr.bf16.mxu0 (!%p1907_p6), %v2593_v19 }
 0x4b6   : > { %2366 = vmatpush3.bf16.msra.mxu0 (!%p1907_p6), %v2365_v34 }
 0x4b7   : > { %v1734_v44 = vpop.permute.xlu0 (!%p1907_p6), %1733 }
 0x4bc   : > { %v1728_v47 = vpop.permute.xlu0 (!%p1907_p6), %1727 }
 0x505   : > { %v1338_v8 = vpop.f32.mrb[16].mxu0 }
 0x506   : > { %v2149_v9 = vpop.f32.mrb[17].mxu0 }
 0x57c   : > { %v1615_v10 = vpop.f32.mrb[18].mxu0 }
 0x57d   : > { %1621 = vrot.lane.b32.xlu1 %v1615_v10, %s2592_s28  ;;  %v2219_v11 = vpop.f32.mrb[19].mxu0 }
 0x5ed   : > { %1631 = sbr.rel (%p1907_p6) target bundleno = 1869 (0x74d), region = 68 }
 0x5ef   : > { %v1622_v13 = vpop.permute.xlu1 %1621 }
 0x5f0   : > { %v1624_v14 = vsel %vm1081_vm8, %v1338_v8, %v1622_v13 }
 0x5f1   : > { %v1625_v15 = vadd.f32 %v1624_v14, %v1619_v12 }
 0x5f3   : > { %1627 = vst.msk [vmem:[#allocation2] sm:$0xf] %vm1626_vm3, %v1625_v15 }
 0x5fa   : > { %v1632_v35 = vld [vmem:[#allocation2] sm:$0xf] }
 0x5fb   : > { %2237 = vmatmul.mubr.msk.f32.vlgmr.msra.gmra.mrb[0].mxu0 %vm1648_vm12, %v1632_v35 }
 0x6ce   : > { %v1718_v37 = vpop.f32.mrb[0].mxu0 }
 0x6cf   : > { %v1719_v43 = vadd.f32 %v1908_v36, %v1718_v37  ;;  %v2238_v38 = vpop.f32.mrb[1].mxu0 }
 0x6d1   : > { %v1722_v40 = vmul.f32 0.01, %v1719_v43 }
 0x6d3   : > { %v1723_v41 = vmax.f32 %v1719_v43, %v1722_v40 }
 0x6d5   : > { %v1736_v45 = vmul.f32 %v1734_v44, %v1723_v41  ;;  %v1730_v48 = vmul.f32 %v1728_v47, %v1723_v41 }
 0x6d7   : > { %1738 = vrot.lane.b32.xlu1 %v1736_v45, %s2598_s16 }
 0x749   : > { %v1739_v49 = vpop.permute.xlu1 %1738 }
 0x74a   : > { %v1741_v50 = vadd.f32 %v1739_v49, %v1730_v48 }
 0x74c   : > { %1743 = vst.msk [vmem:[#allocation6] sm:$0xf] %vm1742_vm13, %v1741_v50 }
 0x74d PF: > { %p2387_p7 = scmp.eq.s32.totalorder %s2661_s14, 1  ;;  %s2599_s19 = smov [#allocation6]  }
 0x74e   : > { %s1751_s11 = sshll.u32 %s2599_s19, 4  ;;  %s1752_s11 = int_to_ptr.vmem [resolvable:$true] %s1751_s11 }
 0x74f   : > { %s2546_s12 = scalar_lea.vmem %s1752_s11, 64  ;;  %p2553_p11 = scmp.lt.s32.totalorder %s1752_s11, %s1752_s11 }
 0x750   : > { %p2547_p8 = scmp.ne.s32.totalorder %s1752_s11, %s2546_s12  ;;  %p2554_p12 = scmp.lt.s32.totalorder %s2546_s12, %s2546_s12 }
 0x752   : > { %p2548_p9 = pnand %p2547_p8, %p2387_p7  ;;  %p2555_p13 = por %p2554_p12, %p2553_p11 }
 0x754   : > { %p2549_p10 = pneg %p2548_p9 }
 0x756   : > { %p2556_p0 = pnand %p2555_p13, %p2549_p10 }
 0x758   : > { %2559 = shalt.err (!%p2556_p0)
}
 0x759   : > { %s2560_s18 = scalar_lea.hbm %s3043_s10, 64 }
 0x75a   : > { %p2561_p1 = scmp.ne.s32.totalorder %s3043_s10, %s2560_s18  ;;  %p2566_p4 = scmp.lt.u32.totalorder %s2560_s18, %s3043_s10 }
 0x75c   : > { %p2562_p2 = pnand %p2561_p1, %p2387_p7 }
 0x75e   : > { %p2563_p3 = pneg %p2562_p2 }
 0x760   : > { %p2568_p5 = pnand %p2566_p4, %p2563_p3 }
 0x762   : > { %2571 = shalt.err (!%p2568_p5)
}
 0x763   : > { %2384 = dma.vmem_to_hbm [thread:$0]  (%p2387_p7), %s1752_s11, 64, %s3043_s10, [#allocation7]  }
 0x764   : > { %2577 = dma.done.wait (%p2387_p7), [#allocation7], 64  }
 0x765   : > { %2579 = vsyncadd (%p2387_p7), [#allocation7], 4294967232 }
 0x766 PF: > { %s21_s13 = sadd.s32 1, %s2582_s13  }
 0x767   : > { %p18_p6 = scmp.ge.s32.totalorder %s21_s13, 4  }
 0x769   :  { %20 = sbr.rel (!%p18_p6) target bundleno = 1 (0x1), region = 101 }
 0x770   :  { %1764 = vsyncpa [#allocation7], 1 }
 0x771   :  { %1766 = vsyncpa [#allocation7 + $0x1], 1 }

</bundles_post_ra>
